<compile_context>
chip_gen: v7x
topology: tpu7x:2x2x1
jax: 0.10.0
libtpu: 0.0.40
codegen_flags: <defaults>
</compile_context>

<pallas_src>
import math
from functools import partial

import jax
import jax.numpy as jnp
from jax.experimental import pallas as pl
from jax.experimental.pallas import tpu as pltpu


# ------------------------------- helpers ----------------------------------- #

def _round_up(x, m):
    return ((x + m - 1) // m) * m


def _tensorcores_per_chip():
    """Best-effort TensorCore-per-device count.

    Only used to pick the grid layout (collapsed batch vs. parallel batch
    axis); both layouts are functionally correct on every chip, so a wrong
    guess costs at most one ~0.35us pipeline step or one idle core.
    """
    try:
        kind = jax.devices()[0].device_kind.lower()
    except Exception:
        return 1
    single_tc_tags = ("v5e", "v5 lite", "v5litepod", "v6e", "v6 lite")
    if any(tag in kind for tag in single_tc_tags):
        return 1
    return 2


# ------------------------------ Pallas kernel ------------------------------ #

def _attention_kernel(xq_ref, xkv_ref,
                      qw_ref, qb_ref, kw_ref, kb_ref, vw_ref, vb_ref,
                      ow_ref, ob_ref, o_ref, *, num_heads, batch_block):
    t = xq_ref.shape[1]
    och_pad = o_ref.shape[2]

    for bi in range(batch_block):                      # static unroll (1 or B)
        xq = xq_ref[bi].astype(jnp.bfloat16)           # (T, C_q)
        xkv = xkv_ref[bi].astype(jnp.bfloat16)         # (S, C_kv)
        out = jnp.zeros((t, och_pad), jnp.float32)     # lane-dense accumulator

        for h in range(num_heads):                     # static unroll
            # Per-head projections (softmax scale already folded into qw/qb).
            qh = jnp.dot(xq, qw_ref[h].astype(jnp.bfloat16),
                         preferred_element_type=jnp.float32) + qb_ref[h]
            kh = jnp.dot(xkv, kw_ref[h].astype(jnp.bfloat16),
                         preferred_element_type=jnp.float32) + kb_ref[h]
            vh = jnp.dot(xkv, vw_ref[h].astype(jnp.bfloat16),
                         preferred_element_type=jnp.float32) + vb_ref[h]

            # Scores: contract last dims -> K consumed transposed by the MXU
            # (no XLU transpose, no k.T materialization).
            s = jax.lax.dot_general(
                qh.astype(jnp.bfloat16), kh.astype(jnp.bfloat16),
                (((1,), (1,)), ((), ())),
                preferred_element_type=jnp.float32)               # (T, S) f32

            m = jnp.max(s, axis=-1, keepdims=True)
            p = jnp.exp(s - m)                                    # f32 softmax
            denom = jnp.sum(p, axis=-1, keepdims=True)            # (T, 1)

            pv = jnp.dot(p.astype(jnp.bfloat16), vh.astype(jnp.bfloat16),
                         preferred_element_type=jnp.float32)      # (T, dv)
            pv = pv * pl.reciprocal(denom, approx=True)           # EUP vrcp

            # Accumulate the output projection per head: no lane concat, score
            # tiles of head h are dead before head h+1 starts.
            out = out + jnp.dot(pv.astype(jnp.bfloat16),
                                ow_ref[h].astype(jnp.bfloat16),
                                preferred_element_type=jnp.float32)

        o_ref[bi] = (out + ob_ref[...]).astype(o_ref.dtype)


# ------------------------------ host wrapper ------------------------------- #

def attention_pallas(params, inputs_q, inputs_kv, num_heads):
    b, t, cq = inputs_q.shape
    _, s, ckv = inputs_kv.shape
    qk = params["q_w"].shape[1]
    vch = params["v_w"].shape[1]
    och = params["o_w"].shape[1]
    dq = qk // num_heads
    dv = vch // num_heads
    scale = 1.0 / math.sqrt(dq)
    och_pad = _round_up(och, 128)

    # Host-side parameter re-layout (pure XLA, cheap):
    #  * fold the softmax scale into the Q projection,
    #  * split weights per head so the kernel never lane-slices,
    #  * zero-pad the output projection to a 128-lane multiple so the kernel's
    #    output stores are unmasked full-lane vst.
    qw = (params["q_w"] * scale).reshape(cq, num_heads, dq).transpose(1, 0, 2)
    qb = (params["q_b"] * scale).reshape(num_heads, 1, dq)
    kw = params["k_w"].reshape(ckv, num_heads, dq).transpose(1, 0, 2)
    kb = params["k_b"].reshape(num_heads, 1, dq)
    vw = params["v_w"].reshape(ckv, num_heads, dv).transpose(1, 0, 2)
    vb = params["v_b"].reshape(num_heads, 1, dv)
    ow = jnp.pad(params["o_w"].reshape(num_heads, dv, och),
                 ((0, 0), (0, 0), (0, och_pad - och)))
    ob = jnp.pad(params["o_b"][None, :], ((0, 0), (0, och_pad - och)))

    # Single-TC chips (v5e/v6e): one grid step, batch unrolled inside the
    # kernel.  Multi-TC chips (v7x / megacore): batch is a "parallel" axis.
    bb = b if _tensorcores_per_chip() == 1 else 1
    grid = (b // bb,)

    def resident(shape):
        nd = len(shape)
        # Constant block index -> weight/bias DMA'd once, stays in VMEM.
        return pl.BlockSpec(shape, lambda i, _nd=nd: (0,) * _nd)

    kern = partial(_attention_kernel, num_heads=num_heads, batch_block=bb)
    out_pad = pl.pallas_call(
        kern,
        out_shape=jax.ShapeDtypeStruct((b, t, och_pad), inputs_q.dtype),
        grid=grid,
        in_specs=[
            pl.BlockSpec((bb, t, cq), lambda i: (i, 0, 0)),
            pl.BlockSpec((bb, s, ckv), lambda i: (i, 0, 0)),
            resident((num_heads, cq, dq)), resident((num_heads, 1, dq)),
            resident((num_heads, ckv, dq)), resident((num_heads, 1, dq)),
            resident((num_heads, ckv, dv)), resident((num_heads, 1, dv)),
            resident((num_heads, dv, och_pad)), resident((1, och_pad)),
        ],
        out_specs=pl.BlockSpec((bb, t, och_pad), lambda i: (i, 0, 0)),
        compiler_params=pltpu.CompilerParams(
            dimension_semantics=("parallel",)),
    )(inputs_q, inputs_kv, qw, qb, kw, kb, vw, vb, ow, ob)
    return out_pad[..., :och]


# --------------------------- pure-JAX reference ---------------------------- #

def attention_ref(params, inputs_q, inputs_kv, num_heads):
    hi = jax.lax.Precision.HIGHEST
    q = jnp.einsum("btc,cd->btd", inputs_q, params["q_w"], precision=hi) + params["q_b"]
    k = jnp.einsum("bsc,cd->bsd", inputs_kv, params["k_w"], precision=hi) + params["k_b"]
    v = jnp.einsum("bsc,cd->bsd", inputs_kv, params["v_w"], precision=hi) + params["v_b"]
    b, t, qk = q.shape
    s_len = k.shape[1]
    vch = v.shape[-1]
    dq = qk // num_heads
    dv = vch // num_heads
    qh = q.reshape(b, t, num_heads, dq)
    kh = k.reshape(b, s_len, num_heads, dq)
    vh = v.reshape(b, s_len, num_heads, dv)
    att = jnp.einsum("bthd,bThd->bhtT", qh, kh, precision=hi) / math.sqrt(dq)
    att = jax.nn.softmax(att, axis=-1)
    summed = jnp.einsum("bhtT,bThd->bthd", att, vh, precision=hi).reshape(b, t, vch)
    return jnp.einsum("btc,cd->btd", summed, params["o_w"], precision=hi) + params["o_b"]


# ----------------------------------- main ----------------------------------- #

if __name__ == "__main__":
    # Shapes consistent with Attention.forward defaults:
    #   qk_channels = inputs_q.shape[-1], v_channels = qk_channels,
    #   output_channels = v_channels.
    B, T, S = 2, 8, 16
    C_Q, C_KV = 32, 16
    NUM_HEADS = 4
    QK_CH = C_Q
    V_CH = QK_CH
    OUT_CH = V_CH

    root = jax.random.PRNGKey(0)
    kq, kk, kv, ko, kxq, kxkv = jax.random.split(root, 6)

    def conv1d_init(key, din, dout, init_scale=1.0):
        std = math.sqrt(2.0 / (din + dout)) * init_scale
        w = std * jax.random.normal(key, (din, dout), jnp.float32)
        b = jnp.zeros((dout,), jnp.float32)
        return w, b

    q_w, q_b = conv1d_init(kq, C_Q, QK_CH)
    k_w, k_b = conv1d_init(kk, C_KV, QK_CH)
    v_w, v_b = conv1d_init(kv, C_KV, V_CH)
    o_w, o_b = conv1d_init(ko, V_CH, OUT_CH)
    params = dict(q_w=q_w, q_b=q_b, k_w=k_w, k_b=k_b,
                  v_w=v_w, v_b=v_b, o_w=o_w, o_b=o_b)

    inputs_q = jax.random.normal(kxq, (B, T, C_Q), jnp.float32)
    inputs_kv = jax.random.normal(kxkv, (B, S, C_KV), jnp.float32)

    out = jax.block_until_ready(
        attention_pallas(params, inputs_q, inputs_kv, NUM_HEADS))
    ref = jax.block_until_ready(
        attention_ref(params, inputs_q, inputs_kv, NUM_HEADS))

    assert out.shape == (B, T, OUT_CH)
    # Tolerance loosened vs. the f32-only version: MXU operands are bf16 and
    # the softmax denominator uses the approximate EUP reciprocal.
    max_err = float(jnp.max(jnp.abs(out - ref)))
    assert jnp.allclose(out, ref, rtol=5e-2, atol=5e-2), max_err
    print("KERNEL_OK")
</pallas_src>

<mosaic_0001>
module attributes {stable_mosaic.version = 11 : i64} {
  func.func @_attention_kernel(%arg0: i32, %arg1: memref<1x8x32xf32, #tpu.memory_space<vmem>>, %arg2: memref<1x16x16xf32, #tpu.memory_space<vmem>>, %arg3: memref<4x32x8xf32, #tpu.memory_space<vmem>>, %arg4: memref<4x1x8xf32, #tpu.memory_space<vmem>>, %arg5: memref<4x16x8xf32, #tpu.memory_space<vmem>>, %arg6: memref<4x1x8xf32, #tpu.memory_space<vmem>>, %arg7: memref<4x16x8xf32, #tpu.memory_space<vmem>>, %arg8: memref<4x1x8xf32, #tpu.memory_space<vmem>>, %arg9: memref<4x8x128xf32, #tpu.memory_space<vmem>>, %arg10: memref<1x128xf32, #tpu.memory_space<vmem>>, %arg11: memref<1x8x128xf32, #tpu.memory_space<vmem>>) attributes {dimension_semantics = [#tpu.dimension_semantics<parallel>], iteration_bounds = array<i64: 2>, scalar_prefetch = 0 : i64, scratch_operands = 0 : i64, tpu.core_type = #tpu.core_type<tc>, window_params = [{transform_indices = @transform_0, window_bounds = array<i64: 1, 8, 32>}, {transform_indices = @transform_1, window_bounds = array<i64: 1, 16, 16>}, {pipeline_mode = #tpu.pipeline_mode<synchronous>, transform_indices = @transform_2, window_bounds = array<i64: 4, 32, 8>}, {pipeline_mode = #tpu.pipeline_mode<synchronous>, transform_indices = @transform_3, window_bounds = array<i64: 4, 1, 8>}, {pipeline_mode = #tpu.pipeline_mode<synchronous>, transform_indices = @transform_4, window_bounds = array<i64: 4, 16, 8>}, {pipeline_mode = #tpu.pipeline_mode<synchronous>, transform_indices = @transform_5, window_bounds = array<i64: 4, 1, 8>}, {pipeline_mode = #tpu.pipeline_mode<synchronous>, transform_indices = @transform_6, window_bounds = array<i64: 4, 16, 8>}, {pipeline_mode = #tpu.pipeline_mode<synchronous>, transform_indices = @transform_7, window_bounds = array<i64: 4, 1, 8>}, {pipeline_mode = #tpu.pipeline_mode<synchronous>, transform_indices = @transform_8, window_bounds = array<i64: 4, 8, 128>}, {pipeline_mode = #tpu.pipeline_mode<synchronous>, transform_indices = @transform_9, window_bounds = array<i64: 1, 128>}, {transform_indices = @transform_10, window_bounds = array<i64: 1, 8, 128>}]} {
    %c0 = arith.constant 0 : index
    %c0_0 = arith.constant 0 : index
    %c0_1 = arith.constant 0 : index
    %0 = vector.load %arg1[%c0, %c0_0, %c0_1] : memref<1x8x32xf32, #tpu.memory_space<vmem>>, vector<1x8x32xf32>
    %1 = vector.shape_cast %0 : vector<1x8x32xf32> to vector<8x32xf32>
    %2 = arith.truncf %1 : vector<8x32xf32> to vector<8x32xbf16>
    %c0_2 = arith.constant 0 : index
    %c0_3 = arith.constant 0 : index
    %c0_4 = arith.constant 0 : index
    %3 = vector.load %arg2[%c0_2, %c0_3, %c0_4] : memref<1x16x16xf32, #tpu.memory_space<vmem>>, vector<1x16x16xf32>
    %4 = vector.shape_cast %3 : vector<1x16x16xf32> to vector<16x16xf32>
    %5 = arith.truncf %4 : vector<16x16xf32> to vector<16x16xbf16>
    %cst = arith.constant 0.000000e+00 : f32
    %6 = vector.broadcast %cst : f32 to vector<8x128xf32>
    %c0_5 = arith.constant 0 : index
    %c0_6 = arith.constant 0 : index
    %c0_7 = arith.constant 0 : index
    %7 = vector.load %arg3[%c0_5, %c0_6, %c0_7] : memref<4x32x8xf32, #tpu.memory_space<vmem>>, vector<1x32x8xf32>
    %8 = vector.shape_cast %7 : vector<1x32x8xf32> to vector<32x8xf32>
    %9 = arith.truncf %8 : vector<32x8xf32> to vector<32x8xbf16>
    %cst_8 = arith.constant dense<0.000000e+00> : vector<8x8xf32>
    %10 = tpu.matmul %2, %9, %cst_8 {dimension_numbers = #tpu.dot_dimension_numbers<[1], [0], [0], [1], [0, 0, 1, 1], [], []>} : vector<8x32xbf16>, vector<32x8xbf16>, vector<8x8xf32> -> vector<8x8xf32>
    %c0_9 = arith.constant 0 : index
    %c0_10 = arith.constant 0 : index
    %c0_11 = arith.constant 0 : index
    %11 = vector.load %arg4[%c0_9, %c0_10, %c0_11] : memref<4x1x8xf32, #tpu.memory_space<vmem>>, vector<1x1x8xf32>
    %12 = vector.shape_cast %11 : vector<1x1x8xf32> to vector<1x8xf32>
    %13 = vector.broadcast %12 : vector<1x8xf32> to vector<8x8xf32>
    %14 = arith.addf %10, %13 : vector<8x8xf32>
    %c0_12 = arith.constant 0 : index
    %c0_13 = arith.constant 0 : index
    %c0_14 = arith.constant 0 : index
    %15 = vector.load %arg5[%c0_12, %c0_13, %c0_14] : memref<4x16x8xf32, #tpu.memory_space<vmem>>, vector<1x16x8xf32>
    %16 = vector.shape_cast %15 : vector<1x16x8xf32> to vector<16x8xf32>
    %17 = arith.truncf %16 : vector<16x8xf32> to vector<16x8xbf16>
    %cst_15 = arith.constant dense<0.000000e+00> : vector<16x8xf32>
    %18 = tpu.matmul %5, %17, %cst_15 {dimension_numbers = #tpu.dot_dimension_numbers<[1], [0], [0], [1], [0, 0, 1, 1], [], []>} : vector<16x16xbf16>, vector<16x8xbf16>, vector<16x8xf32> -> vector<16x8xf32>
    %c0_16 = arith.constant 0 : index
    %c0_17 = arith.constant 0 : index
    %c0_18 = arith.constant 0 : index
    %19 = vector.load %arg6[%c0_16, %c0_17, %c0_18] : memref<4x1x8xf32, #tpu.memory_space<vmem>>, vector<1x1x8xf32>
    %20 = vector.shape_cast %19 : vector<1x1x8xf32> to vector<1x8xf32>
    %21 = vector.broadcast %20 : vector<1x8xf32> to vector<16x8xf32>
    %22 = arith.addf %18, %21 : vector<16x8xf32>
    %c0_19 = arith.constant 0 : index
    %c0_20 = arith.constant 0 : index
    %c0_21 = arith.constant 0 : index
    %23 = vector.load %arg7[%c0_19, %c0_20, %c0_21] : memref<4x16x8xf32, #tpu.memory_space<vmem>>, vector<1x16x8xf32>
    %24 = vector.shape_cast %23 : vector<1x16x8xf32> to vector<16x8xf32>
    %25 = arith.truncf %24 : vector<16x8xf32> to vector<16x8xbf16>
    %cst_22 = arith.constant dense<0.000000e+00> : vector<16x8xf32>
    %26 = tpu.matmul %5, %25, %cst_22 {dimension_numbers = #tpu.dot_dimension_numbers<[1], [0], [0], [1], [0, 0, 1, 1], [], []>} : vector<16x16xbf16>, vector<16x8xbf16>, vector<16x8xf32> -> vector<16x8xf32>
    %c0_23 = arith.constant 0 : index
    %c0_24 = arith.constant 0 : index
    %c0_25 = arith.constant 0 : index
    %27 = vector.load %arg8[%c0_23, %c0_24, %c0_25] : memref<4x1x8xf32, #tpu.memory_space<vmem>>, vector<1x1x8xf32>
    %28 = vector.shape_cast %27 : vector<1x1x8xf32> to vector<1x8xf32>
    %29 = vector.broadcast %28 : vector<1x8xf32> to vector<16x8xf32>
    %30 = arith.addf %26, %29 : vector<16x8xf32>
    %31 = arith.truncf %14 : vector<8x8xf32> to vector<8x8xbf16>
    %32 = arith.truncf %22 : vector<16x8xf32> to vector<16x8xbf16>
    %cst_26 = arith.constant dense<0.000000e+00> : vector<8x16xf32>
    %33 = tpu.matmul %31, %32, %cst_26 {dimension_numbers = #tpu.dot_dimension_numbers<[1], [1], [0], [0], [0, 0, 1, 0], [], []>} : vector<8x8xbf16>, vector<16x8xbf16>, vector<8x16xf32> -> vector<8x16xf32>
    %cst_27 = arith.constant dense<0xFF800000> : vector<8xf32>
    %34 = vector.multi_reduction <maximumf>, %33, %cst_27 [1] : vector<8x16xf32> to vector<8xf32>
    %35 = vector.shape_cast %34 : vector<8xf32> to vector<8x1xf32>
    %36 = vector.broadcast %35 : vector<8x1xf32> to vector<8x16xf32>
    %37 = arith.subf %33, %36 : vector<8x16xf32>
    %38 = math.exp %37 : vector<8x16xf32>
    %cst_28 = arith.constant dense<0.000000e+00> : vector<8xf32>
    %39 = vector.multi_reduction <add>, %38, %cst_28 [1] : vector<8x16xf32> to vector<8xf32>
    %40 = vector.shape_cast %39 : vector<8xf32> to vector<8x1xf32>
    %41 = arith.truncf %38 : vector<8x16xf32> to vector<8x16xbf16>
    %42 = arith.truncf %30 : vector<16x8xf32> to vector<16x8xbf16>
    %cst_29 = arith.constant dense<0.000000e+00> : vector<8x8xf32>
    %43 = tpu.matmul %41, %42, %cst_29 {dimension_numbers = #tpu.dot_dimension_numbers<[1], [0], [0], [1], [0, 0, 1, 1], [], []>} : vector<8x16xbf16>, vector<16x8xbf16>, vector<8x8xf32> -> vector<8x8xf32>
    %44 = tpu.reciprocal %40 {approx = true} : vector<8x1xf32> -> vector<8x1xf32>
    %45 = vector.broadcast %44 : vector<8x1xf32> to vector<8x8xf32>
    %46 = arith.mulf %43, %45 : vector<8x8xf32>
    %47 = arith.truncf %46 : vector<8x8xf32> to vector<8x8xbf16>
    %c0_30 = arith.constant 0 : index
    %c0_31 = arith.constant 0 : index
    %c0_32 = arith.constant 0 : index
    %48 = vector.load %arg9[%c0_30, %c0_31, %c0_32] : memref<4x8x128xf32, #tpu.memory_space<vmem>>, vector<1x8x128xf32>
    %49 = vector.shape_cast %48 : vector<1x8x128xf32> to vector<8x128xf32>
    %50 = arith.truncf %49 : vector<8x128xf32> to vector<8x128xbf16>
    %cst_33 = arith.constant dense<0.000000e+00> : vector<8x128xf32>
    %51 = tpu.matmul %47, %50, %cst_33 {dimension_numbers = #tpu.dot_dimension_numbers<[1], [0], [0], [1], [0, 0, 1, 1], [], []>} : vector<8x8xbf16>, vector<8x128xbf16>, vector<8x128xf32> -> vector<8x128xf32>
    %52 = arith.addf %6, %51 : vector<8x128xf32>
    %c1 = arith.constant 1 : index
    %c0_34 = arith.constant 0 : index
    %c0_35 = arith.constant 0 : index
    %53 = vector.load %arg3[%c1, %c0_34, %c0_35] : memref<4x32x8xf32, #tpu.memory_space<vmem>>, vector<1x32x8xf32>
    %54 = vector.shape_cast %53 : vector<1x32x8xf32> to vector<32x8xf32>
    %55 = arith.truncf %54 : vector<32x8xf32> to vector<32x8xbf16>
    %cst_36 = arith.constant dense<0.000000e+00> : vector<8x8xf32>
    %56 = tpu.matmul %2, %55, %cst_36 {dimension_numbers = #tpu.dot_dimension_numbers<[1], [0], [0], [1], [0, 0, 1, 1], [], []>} : vector<8x32xbf16>, vector<32x8xbf16>, vector<8x8xf32> -> vector<8x8xf32>
    %c1_37 = arith.constant 1 : index
    %c0_38 = arith.constant 0 : index
    %c0_39 = arith.constant 0 : index
    %57 = vector.load %arg4[%c1_37, %c0_38, %c0_39] : memref<4x1x8xf32, #tpu.memory_space<vmem>>, vector<1x1x8xf32>
    %58 = vector.shape_cast %57 : vector<1x1x8xf32> to vector<1x8xf32>
    %59 = vector.broadcast %58 : vector<1x8xf32> to vector<8x8xf32>
    %60 = arith.addf %56, %59 : vector<8x8xf32>
    %c1_40 = arith.constant 1 : index
    %c0_41 = arith.constant 0 : index
    %c0_42 = arith.constant 0 : index
    %61 = vector.load %arg5[%c1_40, %c0_41, %c0_42] : memref<4x16x8xf32, #tpu.memory_space<vmem>>, vector<1x16x8xf32>
    %62 = vector.shape_cast %61 : vector<1x16x8xf32> to vector<16x8xf32>
    %63 = arith.truncf %62 : vector<16x8xf32> to vector<16x8xbf16>
    %cst_43 = arith.constant dense<0.000000e+00> : vector<16x8xf32>
    %64 = tpu.matmul %5, %63, %cst_43 {dimension_numbers = #tpu.dot_dimension_numbers<[1], [0], [0], [1], [0, 0, 1, 1], [], []>} : vector<16x16xbf16>, vector<16x8xbf16>, vector<16x8xf32> -> vector<16x8xf32>
    %c1_44 = arith.constant 1 : index
    %c0_45 = arith.constant 0 : index
    %c0_46 = arith.constant 0 : index
    %65 = vector.load %arg6[%c1_44, %c0_45, %c0_46] : memref<4x1x8xf32, #tpu.memory_space<vmem>>, vector<1x1x8xf32>
    %66 = vector.shape_cast %65 : vector<1x1x8xf32> to vector<1x8xf32>
    %67 = vector.broadcast %66 : vector<1x8xf32> to vector<16x8xf32>
    %68 = arith.addf %64, %67 : vector<16x8xf32>
    %c1_47 = arith.constant 1 : index
    %c0_48 = arith.constant 0 : index
    %c0_49 = arith.constant 0 : index
    %69 = vector.load %arg7[%c1_47, %c0_48, %c0_49] : memref<4x16x8xf32, #tpu.memory_space<vmem>>, vector<1x16x8xf32>
    %70 = vector.shape_cast %69 : vector<1x16x8xf32> to vector<16x8xf32>
    %71 = arith.truncf %70 : vector<16x8xf32> to vector<16x8xbf16>
    %cst_50 = arith.constant dense<0.000000e+00> : vector<16x8xf32>
    %72 = tpu.matmul %5, %71, %cst_50 {dimension_numbers = #tpu.dot_dimension_numbers<[1], [0], [0], [1], [0, 0, 1, 1], [], []>} : vector<16x16xbf16>, vector<16x8xbf16>, vector<16x8xf32> -> vector<16x8xf32>
    %c1_51 = arith.constant 1 : index
    %c0_52 = arith.constant 0 : index
    %c0_53 = arith.constant 0 : index
    %73 = vector.load %arg8[%c1_51, %c0_52, %c0_53] : memref<4x1x8xf32, #tpu.memory_space<vmem>>, vector<1x1x8xf32>
    %74 = vector.shape_cast %73 : vector<1x1x8xf32> to vector<1x8xf32>
    %75 = vector.broadcast %74 : vector<1x8xf32> to vector<16x8xf32>
    %76 = arith.addf %72, %75 : vector<16x8xf32>
    %77 = arith.truncf %60 : vector<8x8xf32> to vector<8x8xbf16>
    %78 = arith.truncf %68 : vector<16x8xf32> to vector<16x8xbf16>
    %cst_54 = arith.constant dense<0.000000e+00> : vector<8x16xf32>
    %79 = tpu.matmul %77, %78, %cst_54 {dimension_numbers = #tpu.dot_dimension_numbers<[1], [1], [0], [0], [0, 0, 1, 0], [], []>} : vector<8x8xbf16>, vector<16x8xbf16>, vector<8x16xf32> -> vector<8x16xf32>
    %cst_55 = arith.constant dense<0xFF800000> : vector<8xf32>
    %80 = vector.multi_reduction <maximumf>, %79, %cst_55 [1] : vector<8x16xf32> to vector<8xf32>
    %81 = vector.shape_cast %80 : vector<8xf32> to vector<8x1xf32>
    %82 = vector.broadcast %81 : vector<8x1xf32> to vector<8x16xf32>
    %83 = arith.subf %79, %82 : vector<8x16xf32>
    %84 = math.exp %83 : vector<8x16xf32>
    %cst_56 = arith.constant dense<0.000000e+00> : vector<8xf32>
    %85 = vector.multi_reduction <add>, %84, %cst_56 [1] : vector<8x16xf32> to vector<8xf32>
    %86 = vector.shape_cast %85 : vector<8xf32> to vector<8x1xf32>
    %87 = arith.truncf %84 : vector<8x16xf32> to vector<8x16xbf16>
    %88 = arith.truncf %76 : vector<16x8xf32> to vector<16x8xbf16>
    %cst_57 = arith.constant dense<0.000000e+00> : vector<8x8xf32>
    %89 = tpu.matmul %87, %88, %cst_57 {dimension_numbers = #tpu.dot_dimension_numbers<[1], [0], [0], [1], [0, 0, 1, 1], [], []>} : vector<8x16xbf16>, vector<16x8xbf16>, vector<8x8xf32> -> vector<8x8xf32>
    %90 = tpu.reciprocal %86 {approx = true} : vector<8x1xf32> -> vector<8x1xf32>
    %91 = vector.broadcast %90 : vector<8x1xf32> to vector<8x8xf32>
    %92 = arith.mulf %89, %91 : vector<8x8xf32>
    %93 = arith.truncf %92 : vector<8x8xf32> to vector<8x8xbf16>
    %c1_58 = arith.constant 1 : index
    %c0_59 = arith.constant 0 : index
    %c0_60 = arith.constant 0 : index
    %94 = vector.load %arg9[%c1_58, %c0_59, %c0_60] : memref<4x8x128xf32, #tpu.memory_space<vmem>>, vector<1x8x128xf32>
    %95 = vector.shape_cast %94 : vector<1x8x128xf32> to vector<8x128xf32>
    %96 = arith.truncf %95 : vector<8x128xf32> to vector<8x128xbf16>
    %cst_61 = arith.constant dense<0.000000e+00> : vector<8x128xf32>
    %97 = tpu.matmul %93, %96, %cst_61 {dimension_numbers = #tpu.dot_dimension_numbers<[1], [0], [0], [1], [0, 0, 1, 1], [], []>} : vector<8x8xbf16>, vector<8x128xbf16>, vector<8x128xf32> -> vector<8x128xf32>
    %98 = arith.addf %52, %97 : vector<8x128xf32>
    %c2 = arith.constant 2 : index
    %c0_62 = arith.constant 0 : index
    %c0_63 = arith.constant 0 : index
    %99 = vector.load %arg3[%c2, %c0_62, %c0_63] : memref<4x32x8xf32, #tpu.memory_space<vmem>>, vector<1x32x8xf32>
    %100 = vector.shape_cast %99 : vector<1x32x8xf32> to vector<32x8xf32>
    %101 = arith.truncf %100 : vector<32x8xf32> to vector<32x8xbf16>
    %cst_64 = arith.constant dense<0.000000e+00> : vector<8x8xf32>
    %102 = tpu.matmul %2, %101, %cst_64 {dimension_numbers = #tpu.dot_dimension_numbers<[1], [0], [0], [1], [0, 0, 1, 1], [], []>} : vector<8x32xbf16>, vector<32x8xbf16>, vector<8x8xf32> -> vector<8x8xf32>
    %c2_65 = arith.constant 2 : index
    %c0_66 = arith.constant 0 : index
    %c0_67 = arith.constant 0 : index
    %103 = vector.load %arg4[%c2_65, %c0_66, %c0_67] : memref<4x1x8xf32, #tpu.memory_space<vmem>>, vector<1x1x8xf32>
    %104 = vector.shape_cast %103 : vector<1x1x8xf32> to vector<1x8xf32>
    %105 = vector.broadcast %104 : vector<1x8xf32> to vector<8x8xf32>
    %106 = arith.addf %102, %105 : vector<8x8xf32>
    %c2_68 = arith.constant 2 : index
    %c0_69 = arith.constant 0 : index
    %c0_70 = arith.constant 0 : index
    %107 = vector.load %arg5[%c2_68, %c0_69, %c0_70] : memref<4x16x8xf32, #tpu.memory_space<vmem>>, vector<1x16x8xf32>
    %108 = vector.shape_cast %107 : vector<1x16x8xf32> to vector<16x8xf32>
    %109 = arith.truncf %108 : vector<16x8xf32> to vector<16x8xbf16>
    %cst_71 = arith.constant dense<0.000000e+00> : vector<16x8xf32>
    %110 = tpu.matmul %5, %109, %cst_71 {dimension_numbers = #tpu.dot_dimension_numbers<[1], [0], [0], [1], [0, 0, 1, 1], [], []>} : vector<16x16xbf16>, vector<16x8xbf16>, vector<16x8xf32> -> vector<16x8xf32>
    %c2_72 = arith.constant 2 : index
    %c0_73 = arith.constant 0 : index
    %c0_74 = arith.constant 0 : index
    %111 = vector.load %arg6[%c2_72, %c0_73, %c0_74] : memref<4x1x8xf32, #tpu.memory_space<vmem>>, vector<1x1x8xf32>
    %112 = vector.shape_cast %111 : vector<1x1x8xf32> to vector<1x8xf32>
    %113 = vector.broadcast %112 : vector<1x8xf32> to vector<16x8xf32>
    %114 = arith.addf %110, %113 : vector<16x8xf32>
    %c2_75 = arith.constant 2 : index
    %c0_76 = arith.constant 0 : index
    %c0_77 = arith.constant 0 : index
    %115 = vector.load %arg7[%c2_75, %c0_76, %c0_77] : memref<4x16x8xf32, #tpu.memory_space<vmem>>, vector<1x16x8xf32>
    %116 = vector.shape_cast %115 : vector<1x16x8xf32> to vector<16x8xf32>
    %117 = arith.truncf %116 : vector<16x8xf32> to vector<16x8xbf16>
    %cst_78 = arith.constant dense<0.000000e+00> : vector<16x8xf32>
    %118 = tpu.matmul %5, %117, %cst_78 {dimension_numbers = #tpu.dot_dimension_numbers<[1], [0], [0], [1], [0, 0, 1, 1], [], []>} : vector<16x16xbf16>, vector<16x8xbf16>, vector<16x8xf32> -> vector<16x8xf32>
    %c2_79 = arith.constant 2 : index
    %c0_80 = arith.constant 0 : index
    %c0_81 = arith.constant 0 : index
    %119 = vector.load %arg8[%c2_79, %c0_80, %c0_81] : memref<4x1x8xf32, #tpu.memory_space<vmem>>, vector<1x1x8xf32>
    %120 = vector.shape_cast %119 : vector<1x1x8xf32> to vector<1x8xf32>
    %121 = vector.broadcast %120 : vector<1x8xf32> to vector<16x8xf32>
    %122 = arith.addf %118, %121 : vector<16x8xf32>
    %123 = arith.truncf %106 : vector<8x8xf32> to vector<8x8xbf16>
    %124 = arith.truncf %114 : vector<16x8xf32> to vector<16x8xbf16>
    %cst_82 = arith.constant dense<0.000000e+00> : vector<8x16xf32>
    %125 = tpu.matmul %123, %124, %cst_82 {dimension_numbers = #tpu.dot_dimension_numbers<[1], [1], [0], [0], [0, 0, 1, 0], [], []>} : vector<8x8xbf16>, vector<16x8xbf16>, vector<8x16xf32> -> vector<8x16xf32>
    %cst_83 = arith.constant dense<0xFF800000> : vector<8xf32>
    %126 = vector.multi_reduction <maximumf>, %125, %cst_83 [1] : vector<8x16xf32> to vector<8xf32>
    %127 = vector.shape_cast %126 : vector<8xf32> to vector<8x1xf32>
    %128 = vector.broadcast %127 : vector<8x1xf32> to vector<8x16xf32>
    %129 = arith.subf %125, %128 : vector<8x16xf32>
    %130 = math.exp %129 : vector<8x16xf32>
    %cst_84 = arith.constant dense<0.000000e+00> : vector<8xf32>
    %131 = vector.multi_reduction <add>, %130, %cst_84 [1] : vector<8x16xf32> to vector<8xf32>
    %132 = vector.shape_cast %131 : vector<8xf32> to vector<8x1xf32>
    %133 = arith.truncf %130 : vector<8x16xf32> to vector<8x16xbf16>
    %134 = arith.truncf %122 : vector<16x8xf32> to vector<16x8xbf16>
    %cst_85 = arith.constant dense<0.000000e+00> : vector<8x8xf32>
    %135 = tpu.matmul %133, %134, %cst_85 {dimension_numbers = #tpu.dot_dimension_numbers<[1], [0], [0], [1], [0, 0, 1, 1], [], []>} : vector<8x16xbf16>, vector<16x8xbf16>, vector<8x8xf32> -> vector<8x8xf32>
    %136 = tpu.reciprocal %132 {approx = true} : vector<8x1xf32> -> vector<8x1xf32>
    %137 = vector.broadcast %136 : vector<8x1xf32> to vector<8x8xf32>
    %138 = arith.mulf %135, %137 : vector<8x8xf32>
    %139 = arith.truncf %138 : vector<8x8xf32> to vector<8x8xbf16>
    %c2_86 = arith.constant 2 : index
    %c0_87 = arith.constant 0 : index
    %c0_88 = arith.constant 0 : index
    %140 = vector.load %arg9[%c2_86, %c0_87, %c0_88] : memref<4x8x128xf32, #tpu.memory_space<vmem>>, vector<1x8x128xf32>
    %141 = vector.shape_cast %140 : vector<1x8x128xf32> to vector<8x128xf32>
    %142 = arith.truncf %141 : vector<8x128xf32> to vector<8x128xbf16>
    %cst_89 = arith.constant dense<0.000000e+00> : vector<8x128xf32>
    %143 = tpu.matmul %139, %142, %cst_89 {dimension_numbers = #tpu.dot_dimension_numbers<[1], [0], [0], [1], [0, 0, 1, 1], [], []>} : vector<8x8xbf16>, vector<8x128xbf16>, vector<8x128xf32> -> vector<8x128xf32>
    %144 = arith.addf %98, %143 : vector<8x128xf32>
    %c3 = arith.constant 3 : index
    %c0_90 = arith.constant 0 : index
    %c0_91 = arith.constant 0 : index
    %145 = vector.load %arg3[%c3, %c0_90, %c0_91] : memref<4x32x8xf32, #tpu.memory_space<vmem>>, vector<1x32x8xf32>
    %146 = vector.shape_cast %145 : vector<1x32x8xf32> to vector<32x8xf32>
    %147 = arith.truncf %146 : vector<32x8xf32> to vector<32x8xbf16>
    %cst_92 = arith.constant dense<0.000000e+00> : vector<8x8xf32>
    %148 = tpu.matmul %2, %147, %cst_92 {dimension_numbers = #tpu.dot_dimension_numbers<[1], [0], [0], [1], [0, 0, 1, 1], [], []>} : vector<8x32xbf16>, vector<32x8xbf16>, vector<8x8xf32> -> vector<8x8xf32>
    %c3_93 = arith.constant 3 : index
    %c0_94 = arith.constant 0 : index
    %c0_95 = arith.constant 0 : index
    %149 = vector.load %arg4[%c3_93, %c0_94, %c0_95] : memref<4x1x8xf32, #tpu.memory_space<vmem>>, vector<1x1x8xf32>
    %150 = vector.shape_cast %149 : vector<1x1x8xf32> to vector<1x8xf32>
    %151 = vector.broadcast %150 : vector<1x8xf32> to vector<8x8xf32>
    %152 = arith.addf %148, %151 : vector<8x8xf32>
    %c3_96 = arith.constant 3 : index
    %c0_97 = arith.constant 0 : index
    %c0_98 = arith.constant 0 : index
    %153 = vector.load %arg5[%c3_96, %c0_97, %c0_98] : memref<4x16x8xf32, #tpu.memory_space<vmem>>, vector<1x16x8xf32>
    %154 = vector.shape_cast %153 : vector<1x16x8xf32> to vector<16x8xf32>
    %155 = arith.truncf %154 : vector<16x8xf32> to vector<16x8xbf16>
    %cst_99 = arith.constant dense<0.000000e+00> : vector<16x8xf32>
    %156 = tpu.matmul %5, %155, %cst_99 {dimension_numbers = #tpu.dot_dimension_numbers<[1], [0], [0], [1], [0, 0, 1, 1], [], []>} : vector<16x16xbf16>, vector<16x8xbf16>, vector<16x8xf32> -> vector<16x8xf32>
    %c3_100 = arith.constant 3 : index
    %c0_101 = arith.constant 0 : index
    %c0_102 = arith.constant 0 : index
    %157 = vector.load %arg6[%c3_100, %c0_101, %c0_102] : memref<4x1x8xf32, #tpu.memory_space<vmem>>, vector<1x1x8xf32>
    %158 = vector.shape_cast %157 : vector<1x1x8xf32> to vector<1x8xf32>
    %159 = vector.broadcast %158 : vector<1x8xf32> to vector<16x8xf32>
    %160 = arith.addf %156, %159 : vector<16x8xf32>
    %c3_103 = arith.constant 3 : index
    %c0_104 = arith.constant 0 : index
    %c0_105 = arith.constant 0 : index
    %161 = vector.load %arg7[%c3_103, %c0_104, %c0_105] : memref<4x16x8xf32, #tpu.memory_space<vmem>>, vector<1x16x8xf32>
    %162 = vector.shape_cast %161 : vector<1x16x8xf32> to vector<16x8xf32>
    %163 = arith.truncf %162 : vector<16x8xf32> to vector<16x8xbf16>
    %cst_106 = arith.constant dense<0.000000e+00> : vector<16x8xf32>
    %164 = tpu.matmul %5, %163, %cst_106 {dimension_numbers = #tpu.dot_dimension_numbers<[1], [0], [0], [1], [0, 0, 1, 1], [], []>} : vector<16x16xbf16>, vector<16x8xbf16>, vector<16x8xf32> -> vector<16x8xf32>
    %c3_107 = arith.constant 3 : index
    %c0_108 = arith.constant 0 : index
    %c0_109 = arith.constant 0 : index
    %165 = vector.load %arg8[%c3_107, %c0_108, %c0_109] : memref<4x1x8xf32, #tpu.memory_space<vmem>>, vector<1x1x8xf32>
    %166 = vector.shape_cast %165 : vector<1x1x8xf32> to vector<1x8xf32>
    %167 = vector.broadcast %166 : vector<1x8xf32> to vector<16x8xf32>
    %168 = arith.addf %164, %167 : vector<16x8xf32>
    %169 = arith.truncf %152 : vector<8x8xf32> to vector<8x8xbf16>
    %170 = arith.truncf %160 : vector<16x8xf32> to vector<16x8xbf16>
    %cst_110 = arith.constant dense<0.000000e+00> : vector<8x16xf32>
    %171 = tpu.matmul %169, %170, %cst_110 {dimension_numbers = #tpu.dot_dimension_numbers<[1], [1], [0], [0], [0, 0, 1, 0], [], []>} : vector<8x8xbf16>, vector<16x8xbf16>, vector<8x16xf32> -> vector<8x16xf32>
    %cst_111 = arith.constant dense<0xFF800000> : vector<8xf32>
    %172 = vector.multi_reduction <maximumf>, %171, %cst_111 [1] : vector<8x16xf32> to vector<8xf32>
    %173 = vector.shape_cast %172 : vector<8xf32> to vector<8x1xf32>
    %174 = vector.broadcast %173 : vector<8x1xf32> to vector<8x16xf32>
    %175 = arith.subf %171, %174 : vector<8x16xf32>
    %176 = math.exp %175 : vector<8x16xf32>
    %cst_112 = arith.constant dense<0.000000e+00> : vector<8xf32>
    %177 = vector.multi_reduction <add>, %176, %cst_112 [1] : vector<8x16xf32> to vector<8xf32>
    %178 = vector.shape_cast %177 : vector<8xf32> to vector<8x1xf32>
    %179 = arith.truncf %176 : vector<8x16xf32> to vector<8x16xbf16>
    %180 = arith.truncf %168 : vector<16x8xf32> to vector<16x8xbf16>
    %cst_113 = arith.constant dense<0.000000e+00> : vector<8x8xf32>
    %181 = tpu.matmul %179, %180, %cst_113 {dimension_numbers = #tpu.dot_dimension_numbers<[1], [0], [0], [1], [0, 0, 1, 1], [], []>} : vector<8x16xbf16>, vector<16x8xbf16>, vector<8x8xf32> -> vector<8x8xf32>
    %182 = tpu.reciprocal %178 {approx = true} : vector<8x1xf32> -> vector<8x1xf32>
    %183 = vector.broadcast %182 : vector<8x1xf32> to vector<8x8xf32>
    %184 = arith.mulf %181, %183 : vector<8x8xf32>
    %185 = arith.truncf %184 : vector<8x8xf32> to vector<8x8xbf16>
    %c3_114 = arith.constant 3 : index
    %c0_115 = arith.constant 0 : index
    %c0_116 = arith.constant 0 : index
    %186 = vector.load %arg9[%c3_114, %c0_115, %c0_116] : memref<4x8x128xf32, #tpu.memory_space<vmem>>, vector<1x8x128xf32>
    %187 = vector.shape_cast %186 : vector<1x8x128xf32> to vector<8x128xf32>
    %188 = arith.truncf %187 : vector<8x128xf32> to vector<8x128xbf16>
    %cst_117 = arith.constant dense<0.000000e+00> : vector<8x128xf32>
    %189 = tpu.matmul %185, %188, %cst_117 {dimension_numbers = #tpu.dot_dimension_numbers<[1], [0], [0], [1], [0, 0, 1, 1], [], []>} : vector<8x8xbf16>, vector<8x128xbf16>, vector<8x128xf32> -> vector<8x128xf32>
    %190 = arith.addf %144, %189 : vector<8x128xf32>
    %c0_118 = arith.constant 0 : index
    %c0_119 = arith.constant 0 : index
    %191 = vector.load %arg10[%c0_118, %c0_119] : memref<1x128xf32, #tpu.memory_space<vmem>>, vector<1x128xf32>
    %192 = vector.broadcast %191 : vector<1x128xf32> to vector<8x128xf32>
    %193 = arith.addf %190, %192 : vector<8x128xf32>
    %c0_120 = arith.constant 0 : index
    %c0_121 = arith.constant 0 : index
    %c0_122 = arith.constant 0 : index
    %194 = vector.load %arg11[%c0_120, %c0_121, %c0_122] : memref<1x8x128xf32, #tpu.memory_space<vmem>>, vector<1x8x128xf32>
    %195 = vector.shape_cast %194 : vector<1x8x128xf32> to vector<8x128xf32>
    %196 = vector.shape_cast %193 : vector<8x128xf32> to vector<1x8x128xf32>
    tpu.vector_store %arg11[%c0_120, %c0_121, %c0_122], %196 {strides = array<i32>} : memref<1x8x128xf32, #tpu.memory_space<vmem>>, vector<1x8x128xf32>,
    return
  }
  func.func @transform_0(%arg0: i32) -> (i32, i32, i32) {
    %c0_i32 = arith.constant 0 : i32
    %c0_i32_0 = arith.constant 0 : i32
    %c0_i32_1 = arith.constant 0 : i32
    return %arg0, %c0_i32, %c0_i32_0 : i32, i32, i32
  }
  func.func @transform_1(%arg0: i32) -> (i32, i32, i32) {
    %c0_i32 = arith.constant 0 : i32
    %c0_i32_0 = arith.constant 0 : i32
    %c0_i32_1 = arith.constant 0 : i32
    return %arg0, %c0_i32, %c0_i32_0 : i32, i32, i32
  }
  func.func @transform_2(%arg0: i32) -> (i32, i32, i32) {
    %c0_i32 = arith.constant 0 : i32
    %c0_i32_0 = arith.constant 0 : i32
    %c0_i32_1 = arith.constant 0 : i32
    %c0_i32_2 = arith.constant 0 : i32
    return %c0_i32, %c0_i32_0, %c0_i32_1 : i32, i32, i32
  }
  func.func @transform_3(%arg0: i32) -> (i32, i32, i32) {
    %c0_i32 = arith.constant 0 : i32
    %c0_i32_0 = arith.constant 0 : i32
    %c0_i32_1 = arith.constant 0 : i32
    %c0_i32_2 = arith.constant 0 : i32
    return %c0_i32, %c0_i32_0, %c0_i32_1 : i32, i32, i32
  }
  func.func @transform_4(%arg0: i32) -> (i32, i32, i32) {
    %c0_i32 = arith.constant 0 : i32
    %c0_i32_0 = arith.constant 0 : i32
    %c0_i32_1 = arith.constant 0 : i32
    %c0_i32_2 = arith.constant 0 : i32
    return %c0_i32, %c0_i32_0, %c0_i32_1 : i32, i32, i32
  }
  func.func @transform_5(%arg0: i32) -> (i32, i32, i32) {
    %c0_i32 = arith.constant 0 : i32
    %c0_i32_0 = arith.constant 0 : i32
    %c0_i32_1 = arith.constant 0 : i32
    %c0_i32_2 = arith.constant 0 : i32
    return %c0_i32, %c0_i32_0, %c0_i32_1 : i32, i32, i32
  }
  func.func @transform_6(%arg0: i32) -> (i32, i32, i32) {
    %c0_i32 = arith.constant 0 : i32
    %c0_i32_0 = arith.constant 0 : i32
    %c0_i32_1 = arith.constant 0 : i32
    %c0_i32_2 = arith.constant 0 : i32
    return %c0_i32, %c0_i32_0, %c0_i32_1 : i32, i32, i32
  }
  func.func @transform_7(%arg0: i32) -> (i32, i32, i32) {
    %c0_i32 = arith.constant 0 : i32
    %c0_i32_0 = arith.constant 0 : i32
    %c0_i32_1 = arith.constant 0 : i32
    %c0_i32_2 = arith.constant 0 : i32
    return %c0_i32, %c0_i32_0, %c0_i32_1 : i32, i32, i32
  }
  func.func @transform_8(%arg0: i32) -> (i32, i32, i32) {
    %c0_i32 = arith.constant 0 : i32
    %c0_i32_0 = arith.constant 0 : i32
    %c0_i32_1 = arith.constant 0 : i32
    %c0_i32_2 = arith.constant 0 : i32
    return %c0_i32, %c0_i32_0, %c0_i32_1 : i32, i32, i32
  }
  func.func @transform_9(%arg0: i32) -> (i32, i32) {
    %c0_i32 = arith.constant 0 : i32
    %c0_i32_0 = arith.constant 0 : i32
    %c0_i32_1 = arith.constant 0 : i32
    return %c0_i32, %c0_i32_0 : i32, i32
  }
  func.func @transform_10(%arg0: i32) -> (i32, i32, i32) {
    %c0_i32 = arith.constant 0 : i32
    %c0_i32_0 = arith.constant 0 : i32
    %c0_i32_1 = arith.constant 0 : i32
    return %arg0, %c0_i32, %c0_i32_0 : i32, i32, i32
  }
}

</mosaic_0001>

<bundles_post_ra>
// kernel: tpu_custom_call.1
= control target key start
LH: loop header
LB: loop body
LE: loop exit
PB: predicated region body
PF: predicated region fallthrough
CT: control target
= control target key end

     0   :  { %15 = vsyncpa [#allocation3], 0  ;;  %s2597_s0 = inlined_call_operand.vmem [shape: f32[2,8,32], index: 0, kind: input, shape index: {}]   ;;  %s2598_s1 = inlined_call_operand.vmem [shape: f32[2,16,16], index: 1, kind: input, shape index: {}]   ;;  %s2599_s2 = inlined_call_operand.vmem [shape: f32[4,32,8], index: 2, kind: input, shape index: {}]   ;;  %s2600_s3 = inlined_call_operand.vmem [shape: f32[4,1,8], index: 3, kind: input, shape index: {}]   ;;  %s2601_s4 = inlined_call_operand.vmem [shape: f32[4,16,8], index: 4, kind: input, shape index: {}]   ;;  %s2602_s5 = inlined_call_operand.vmem [shape: f32[4,1,8], index: 5, kind: input, shape index: {}]   ;;  %s2603_s6 = inlined_call_operand.vmem [shape: f32[4,16,8], index: 6, kind: input, shape index: {}]   ;;  %s2604_s7 = inlined_call_operand.vmem [shape: f32[4,1,8], index: 7, kind: input, shape index: {}]   ;;  %s2605_s8 = inlined_call_operand.vmem [shape: f32[4,8,128], index: 8, kind: input, shape index: {}]   ;;  %s2606_s9 = inlined_call_operand.vmem [shape: f32[1,128], index: 9, kind: input, shape index: {}]   ;;  %s2607_s10 = inlined_call_operand.hbm [shape: f32[2,8,128], index: 10, kind: output, shape index: {}]  }
   0x1   :  { %17 = vsyncpa [#allocation3 + $0x1], 0  ;;  %s2209_s13 = smov 0   ;;  %s2211_s14 = smov 0  }
   0x2   :  { %s2213_s15 = smov 0   ;;  %s2215_s16 = smov 0  }
   0x3 LB: > { %s2230_s17 = sadd.s32 4294967295, %s2149_s16   ;;  %s1740_s18 = sadd.s32 4294967294, %s2149_s16   ;;  %s2149_s16 = sphi %s2215_s16, %s2613_s16   ;;  %s2145_s15 = sphi %s2213_s15, %s2612_s15   ;;  %s2141_s14 = sphi %s2211_s14, %s2611_s14   ;;  %s2137_s13 = sphi %s2209_s13, %s2610_s13  }
   0x4   : > { %s2234_s19 = sadd.s32 1, %s2149_s16   ;;  %s250_s20 = sadd.s32 1, %s2145_s15 }
   0x5   : > { %s247_s21 = ssub.s32 %s2149_s16, %s2234_s19  ;;  %p260_p0 = scmp.ne.s32.totalorder %s2145_s15, %s2141_s14 }
   0x6   : > { %p248_p1 = scmp.eq.s32.totalorder %s247_s21, 0  ;;  %p261_p2 = scmp.eq.s32.totalorder %s2230_s17, 1 }
   0x7   : > { %p266_p3 = scmp.ne.s32.totalorder %s2141_s14, %s2137_s13  ;;  %p267_p4 = scmp.eq.s32.totalorder %s1740_s18, 1 }
   0x8   : > { %s2245_s22 = scalar_select %p248_p1, %s2145_s15, %s250_s20  }
   0x9   : > { %p2247_p5 = por %p261_p2, %p260_p0  ;;  %p2251_p6 = por %p267_p4, %p266_p3 }
   0xa   : > { %p1743_p7 = scmp.ge.s32.totalorder %s2149_s16, 1  ;;  %p324_p8 = scmp.lt.s32.totalorder %s2149_s16, 3 }
   0xc   : > { %p325_p9 = pnand %p1743_p7, %p324_p8 }
   0xd   : > { %v438_v0 = vld [vmem:[%s2601_s4] sm:$0xff] (!%p325_p9)  ;;  %v439_v1 = vld [vmem:[%s2601_s4 + $0x8] sm:$0xff] (!%p325_p9)  ;;  %p366_p10 = scmp.lt.s32.totalorder (!%p325_p9), %s2230_s17, 1  ;;  %v2151_v3 = vmov (!%p325_p9), 0.0   ;;  %v383_v6 = vld [vmem:[%s2599_s2 + $0x10] sm:$0xff] (!%p325_p9)  ;;  %vm2152_vm0 = vmmov (!%p325_p9), 0  }
   0xe   : > { %328 = sbr.rel (%p325_p9) target bundleno = 3312 (0xcf0), region = 60  ;;  %v381_v2 = vld [vmem:[%s2599_s2] sm:$0xff] (!%p325_p9)  ;;  %1886 = vmatprep.subr.bf16.mxu1 (!%p325_p9), %v2151_v3  ;;  %v440_v4 = vpack.c.bf16 (!%p325_p9), %v439_v1, %v438_v0  ;;  %1878 = vmatprep.subr.bf16.mxu0 (!%p325_p9), %v2151_v3  ;;  %v382_v5 = vld [vmem:[%s2599_s2 + $0x8] sm:$0xff] (!%p325_p9)  ;;  %v384_v7 = vld [vmem:[%s2599_s2 + $0x18] sm:$0xff] (!%p325_p9)  ;;  %vm448_vm1 = vcmask (!%p325_p9), 130048   ;;  %vm394_vm2 = vcmask (!%p325_p9), 261120  }
   0xf   : > { %1888 = vmatprep.mubr.msk.bf16.mxu1 (!%p325_p9), %vm2152_vm0, %v2151_v3  ;;  %v385_v8 = vpack.c.bf16 (!%p325_p9), %v382_v5, %v381_v2  ;;  %1882 = vmatprep.mubr.msk.bf16.mxu0 (!%p325_p9), %vm2152_vm0, %v2151_v3  ;;  %v386_v9 = vpack.c.bf16 (!%p325_p9), %v384_v7, %v383_v6  ;;  %v493_v15 = vld [vmem:[%s2603_s6] sm:$0xff] (!%p325_p9)  ;;  %v494_v16 = vld [vmem:[%s2603_s6 + $0x8] sm:$0xff] (!%p325_p9)  ;;  %vm546_vm3 = vcmask (!%p325_p9), 64512   ;;  %v1758_v50 = vld [vmem:[%s2599_s2 + $0x30] sm:$0xff] (!%p325_p9)  ;;  %vm924_vm4 = vcmask (!%p325_p9), 1043456   ;;  %s1822_s21 = sshll.u32 (!%p325_p9), %s2230_s17, 7 }
  0x10   : > { %1887 = vmatpush3.bf16.msra.mxu1 (!%p325_p9), %v440_v4  ;;  %v495_v17 = vpack.c.bf16 (!%p325_p9), %v494_v16, %v493_v15  ;;  %v1750_v18 = vld [vmem:[%s2602_s5] ss:$0 sm:$0xff] (!%p325_p9)  ;;  %v1757_v48 = vld [vmem:[%s2599_s2 + $0x28] sm:$0xff] (!%p325_p9)  ;;  %v1759_v51 = vld [vmem:[%s2599_s2 + $0x38] sm:$0xff] (!%p325_p9)  ;;  %s2555_s29 = scalar_lea.hbm (!%p325_p9), %s2607_s10, %s1822_s21 }
  0x11   : > { %1879 = vmatpush3.bf16.msra.mxu0 (!%p325_p9), %v385_v8  ;;  %1892 = vmatprep.subr.bf16.mxu1 (!%p325_p9), %v2151_v3  ;;  %v1748_v27 = vld [vmem:[%s2600_s3] ss:$0 sm:$0xff] (!%p325_p9)  ;;  %v658_v52 = vpack.c.bf16 (!%p325_p9), %v1759_v51, %v1758_v50  ;;  %v1763_v56 = vld [vmem:[%s2601_s4 + $0x10] sm:$0xff] (!%p325_p9)  ;;  %v1764_v57 = vld [vmem:[%s2601_s4 + $0x18] sm:$0xff] (!%p325_p9) }
  0x12   : > { %1880 = vmatprep.subr.bf16.mxu0 (!%p325_p9), %v2151_v3  ;;  %v1752_v39 = vld [vmem:[%s2604_s7] ss:$0 sm:$0xff] (!%p325_p9)  ;;  %v710_v59 = vpack.c.bf16 (!%p325_p9), %v1764_v57, %v1763_v56  ;;  %v1768_v2 = vld [vmem:[%s2603_s6 + $0x10] sm:$0xff] (!%p325_p9)  ;;  %v1769_v4 = vld [vmem:[%s2603_s6 + $0x18] sm:$0xff] (!%p325_p9) }
  0x13   : > { %v1756_v47 = vld [vmem:[%s2599_s2 + $0x20] sm:$0xff] (!%p325_p9)  ;;  %v763_v5 = vpack.c.bf16 (!%p325_p9), %v1769_v4, %v1768_v2  ;;  %v1786_v51 = vld [vmem:[%s2601_s4 + $0x28] sm:$0xff] (!%p325_p9)  ;;  %v1780_v4 = vld [vmem:[%s2599_s2 + $0x50] sm:$0xff] (!%p325_p9) }
  0x14   : > { %v657_v49 = vpack.c.bf16 (!%p325_p9), %v1757_v48, %v1756_v47  ;;  %v1785_v50 = vld [vmem:[%s2601_s4 + $0x20] sm:$0xff] (!%p325_p9) }
  0x15   : > { %s367_s26 = scalar_select %p366_p10, %s2230_s17, 1  ;;  %1881 = vmatpush3.bf16.msra.mxu0 %v386_v9  ;;  %v1778_v57 = vld [vmem:[%s2599_s2 + $0x40] sm:$0xff] }
  0x16   : > { %1898 = vmatprep.subr.bf16.mxu0 %v2151_v3 }
  0x17   : > { %s1825_s27 = sshll.u32 %s367_s26, 4  ;;  %s1745_s28 = sshll.u32 %s367_s26, 3 }
  0x18   : > { %s374_s11 = scalar_lea.vmem %s2598_s1, %s1825_s27  ;;  %s369_s20 = scalar_lea.vmem %s2597_s0, %s1745_s28 }
  0x19   : > { %v378_v10 = vld [vmem:[%s374_s11] sm:$0xff]  ;;  %v379_v11 = vld [vmem:[%s374_s11 + $0x8] sm:$0xff]  ;;  %s363_s11 = sand.u32 1, %s2141_s14  }
  0x1a   : > { %v376_v12 = vld [vmem:[%s369_s20] sm:$0xff]  ;;  %v2291_v13 = vpack.c.bf16 %v379_v11, %v378_v10  ;;  %s1744_s12 = sshll.u32 %s363_s11, 3  ;;  %s1656_s17 = scalar_lea.sflag [#allocation3], %s363_s11 }
  0x1b   : > { %v2293_v14 = vpack.c.bf16 %v376_v12, %v376_v12  ;;  %v1766_v10 = vld [vmem:[%s2602_s5 + $0x1] ss:$0 sm:$0xff]  ;;  %s365_s25 = scalar_lea.vmem [#allocation2], %s1744_s12  ;;  %s2153_s12 = smov [#allocation2]  }
  0x1c   : > { %1889 = vmatmul.mubr.msk.bf16.vlgmr.msra.gmra.mrb[0].mxu1 %vm448_vm1, %v2291_v13  ;;  %s1669_s26 = sshll.u32 %s365_s25, 4  ;;  %s2091_s18 = sshll.u32 %s2153_s12, 4  ;;  %s2557_s26 = int_to_ptr.vmem [resolvable:$true] %s1669_s26  ;;  %s2092_s18 = int_to_ptr.vmem [resolvable:$false] %s2091_s18 }
  0x1d   : > { %1894 = vmatprep.mubr.msk.bf16.mxu1 %vm2152_vm0, %v2151_v3  ;;  %1883 = vmatmul.mubr.msk.bf16.vlgmr.msra.gmra.mrb[0].mxu0 %vm394_vm2, %v2293_v14  ;;  %s2087_s30 = scalar_lea.vmem %s2557_s26, 128  ;;  %s2093_s20 = scalar_lea.vmem %s2092_s18, 256 }
  0x1e   : > { %1900 = vmatprep.mubr.msk.bf16.mxu0 %vm2152_vm0, %v2151_v3  ;;  %1893 = vmatpush3.bf16.msra.mxu1 %v495_v17  ;;  %p2088_p11 = scmp.ne.s32.totalorder %s2557_s26, %s2087_s30  ;;  %p2094_p0 = scmp.lt.s32.totalorder %s2557_s26, %s2092_s18 }
  0x1f   : > { %1904 = vmatprep.subr.bf16.mxu1 %v2151_v3  ;;  %p2095_p1 = scmp.lt.s32.totalorder %s2093_s20, %s2087_s30 }
  0x20   : > { %p2089_p12 = pnand %p2088_p11, %p2247_p5 }
  0x21   : > { %p2096_p2 = por %p2095_p1, %p2094_p0 }
  0x22   : > { %p2090_p13 = pneg %p2089_p12 }
  0x24   : > { %1895 = vmatmul.mubr.msk.bf16.vlgmr.msra.gmra.mrb[4].mxu1 %vm448_vm1, %v2291_v13  ;;  %p2097_p3 = pnand %p2096_p2, %p2090_p13 }
  0x25   : > { %1906 = vmatprep.mubr.msk.bf16.mxu1 %vm2152_vm0, %v2151_v3 }
  0xef   : > { %v486_v19 = vpop.f32.mrb[0].mxu1 }
  0xf0   : > { %v1890_v20 = vpop.f32.mrb[1].mxu1  ;;  %v432_v22 = vpop.f32.mrb[0].mxu0  ;;  %v487_v23 = vadd.f32 %v1750_v18, %v486_v19  ;;  %v1761_v19 = vld [vmem:[%s2600_s3 + $0x1] ss:$0 sm:$0xff] }
  0xf1   : > { %v489_v21 = vpop.f32.mrb[2].mxu1  ;;  %v1884_v26 = vpop.f32.mrb[1].mxu0  ;;  %v433_v31 = vadd.f32 %v1748_v27, %v432_v22 }
  0xf2   : > { %v490_v24 = vadd.f32 %v1750_v18, %v489_v21  ;;  %v1891_v25 = vpop.f32.mrb[3].mxu1  ;;  %v435_v28 = vpop.f32.mrb[2].mxu0 }
  0xf3   : > { %v1885_v30 = vpop.f32.mrb[3].mxu0  ;;  %v544_v33 = vpack.c.bf16 %v433_v31, %v433_v31 }
  0xf4   : > { %v545_v29 = vpack.c.bf16 %v490_v24, %v487_v23 }
  0xf6   : > { %v551_v32 = vsel %vm546_vm3, %v545_v29, 0  ;;  %v1771_v29 = vld [vmem:[%s2604_s7 + $0x1] ss:$0 sm:$0xff] }
  0xf7   : > { %1899 = vmatpush3.bf16.xpose.msra.mxu0 %v551_v32  ;;  %v537_v40 = vpop.f32.mrb[4].mxu1 }
  0xf8   : > { %1910 = vmatprep.subr.bf16.mxu0 %v2151_v3  ;;  %v538_v41 = vadd.f32 %v1752_v39, %v537_v40  ;;  %v1896_v42 = vpop.f32.mrb[5].mxu1 }
  0xf9   : > { %v540_v43 = vpop.f32.mrb[6].mxu1 }
  0xfa   : > { %v541_v44 = vadd.f32 %v1752_v39, %v540_v43  ;;  %v1897_v45 = vpop.f32.mrb[7].mxu1 }
  0xfc   : > { %v603_v46 = vpack.c.bf16 %v541_v44, %v538_v41  ;;  %v650_v41 = vld [vmem:[%s2605_s8] sm:$0xff] }
  0xfd   : > { %v651_v42 = vpack.c.bf16 %v650_v41, %v650_v41 }
  0xfe   : > { %1901 = vmatmul.mubr.msk.bf16.vlgmr.msra.gmra.mrb[4].mxu0 %vm546_vm3, %v544_v33  ;;  %1905 = vmatpush3.bf16.msra.mxu1 %v603_v46 }
  0xff   : > { %1914 = vmatprep.mubr.msk.bf16.mxu0 %vm2152_vm0, %v2151_v3  ;;  %1918 = vmatprep.subr.bf16.mxu1 %v2151_v3  ;;  %v972_v46 = vsel %vm924_vm4, %v651_v42, 0  ;;  %v1793_v42 = vld [vmem:[%s2604_s7 + $0x2] ss:$0 sm:$0xff] }
 0x100   : > { %1911 = vmatpush3.bf16.msra.mxu0 %v657_v49 }
 0x101   : > { %1912 = vmatprep.subr.bf16.mxu0 %v2151_v3 }
 0x104   : > { %1913 = vmatpush3.bf16.msra.mxu0 %v658_v52  ;;  %v1775_v52 = vld [vmem:[%s2605_s8 + $0x8] sm:$0xff] }
 0x105   : > { %1924 = vmatprep.subr.bf16.mxu0 %v2151_v3 }
 0x107   : > { %1915 = vmatmul.mubr.msk.bf16.vlgmr.msra.gmra.mrb[8].mxu0 %vm394_vm2, %v2293_v14 }
 0x108   : > { %1926 = vmatprep.mubr.msk.bf16.mxu0 %vm2152_vm0, %v2151_v3  ;;  %1925 = vmatpush3.bf16.msra.mxu0 %v763_v5  ;;  %v1781_v5 = vld [vmem:[%s2599_s2 + $0x58] sm:$0xff] }
 0x109   : > { %1936 = vmatprep.subr.bf16.mxu0 %v2151_v3 }
 0x10f   : > { %1927 = vmatmul.mubr.msk.bf16.vlgmr.msra.gmra.mrb[12].mxu0 %vm448_vm1, %v2291_v13 }
 0x110   : > { %1938 = vmatprep.mubr.msk.bf16.mxu0 %vm2152_vm0, %v2151_v3 }
 0x1d1   : > { %v587_v34 = vpop.f32.mrb[4].mxu0 }
 0x1d2   : > { %v1902_v35 = vpop.f32.mrb[5].mxu0  ;;  %v593_v36 = vsel %vm448_vm1, %v587_v34, -inf }
 0x1d3   : > { %594 = vmax.xlane.f32.xlu0 %v593_v36  ;;  %v590_v37 = vpop.f32.mrb[6].mxu0 }
 0x1d4   : > { %v1903_v38 = vpop.f32.mrb[7].mxu0 }
 0x1da   : > { %v701_v62 = vpop.f32.mrb[8].mxu0 }
 0x1db   : > { %v1916_v63 = vpop.f32.mrb[9].mxu0  ;;  %v702_v21 = vadd.f32 %v1761_v19, %v701_v62 }
 0x1dc   : > { %v704_v0 = vpop.f32.mrb[10].mxu0 }
 0x1dd   : > { %v1917_v1 = vpop.f32.mrb[11].mxu0  ;;  %v813_v23 = vpack.c.bf16 %v702_v21, %v702_v21 }
 0x1e2   : > { %v806_v30 = vpop.f32.mrb[12].mxu0 }
 0x1e3   : > { %v807_v31 = vadd.f32 %v1771_v29, %v806_v30  ;;  %v1928_v32 = vpop.f32.mrb[13].mxu0  ;;  %v1783_v30 = vld [vmem:[%s2600_s3 + $0x2] ss:$0 sm:$0xff] }
 0x1e4   : > { %v809_v33 = vpop.f32.mrb[14].mxu0 }
 0x1e5   : > { %v1929_v35 = vpop.f32.mrb[15].mxu0 }
 0x260   : > { %v595_v53 = vpop.xlane.xlu0 %594 }
 0x261   : > { %v596_v54 = vsub.f32 %v587_v34, %v595_v53  ;;  %v810_v34 = vadd.f32 %v1771_v29, %v809_v33  ;;  %v1072_v53 = vpack.c.bf16 %v1786_v51, %v1785_v50 }
 0x263   : > { %v597_v55 = vmul.f32 1.442695, %v596_v54  ;;  %v871_v36 = vpack.c.bf16 %v810_v34, %v807_v31  ;;  %v920_v54 = vpack.c.bf16 %v1775_v52, %v1775_v52 }
 0x265   : > { %2071 = vpow2.f32 %v597_v55  ;;  %1937 = vmatpush3.bf16.msra.mxu0 %v871_v36  ;;  %v926_v55 = vsel %vm924_vm4, %v920_v54, 0 }
 0x266   : > { %1948 = vmatprep.subr.bf16.mxu0 %v2151_v3 }
 0x26f   : > { %v2072_v58 = vpop.eup %2071 }
 0x270   : > { %v599_v60 = vsel %vm448_vm1, %v2072_v58, 0.0  ;;  %v602_v61 = vpack.c.bf16 %v2072_v58, %v2072_v58  ;;  %v1779_v58 = vld [vmem:[%s2599_s2 + $0x48] sm:$0xff] }
 0x271   : > { %600 = vadd.xlane.f32.xlu1 %v599_v60  ;;  %v1019_v0 = vpack.c.bf16 %v1779_v58, %v1778_v57 }
 0x272   : > { %1907 = vmatmul.mubr.msk.bf16.vlgmr.msra.gmra.mrb[8].mxu1 %vm448_vm1, %v602_v61 }
 0x273   : > { %1919 = vmatpush3.bf16.msra.mxu1 %v710_v59  ;;  %1920 = vmatprep.mubr.msk.bf16.mxu1 %vm2152_vm0, %v2151_v3 }
 0x274   : > { %1930 = vmatprep.subr.bf16.mxu1 %v2151_v3 }
 0x27a   : > { %1921 = vmatmul.mubr.msk.bf16.vlgmr.msra.gmra.mrb[12].mxu1 %vm448_vm1, %v2291_v13 }
 0x27b   : > { %1932 = vmatprep.mubr.msk.bf16.mxu1 %vm2152_vm0, %v2151_v3 }
 0x2fe   : > { %v601_v40 = vpop.xlane.xlu1 %600 }
 0x345   : > { %v641_v6 = vpop.f32.mrb[8].mxu1 }
 0x346   : > { %v1908_v7 = vpop.f32.mrb[9].mxu1 }
 0x347   : > { %v644_v8 = vpop.f32.mrb[10].mxu1 }
 0x348   : > { %v1909_v9 = vpop.f32.mrb[11].mxu1 }
 0x34d   : > { %v753_v11 = vpop.f32.mrb[12].mxu1 }
 0x34e   : > { %v1922_v12 = vpop.f32.mrb[13].mxu1  ;;  %v754_v16 = vadd.f32 %v1766_v10, %v753_v11  ;;  %v1788_v11 = vld [vmem:[%s2602_s5 + $0x2] ss:$0 sm:$0xff] }
 0x34f   : > { %v756_v15 = vpop.f32.mrb[14].mxu1 }
 0x350   : > { %v757_v17 = vadd.f32 %v1766_v10, %v756_v15  ;;  %v1923_v18 = vpop.f32.mrb[15].mxu1 }
 0x352   : > { %v814_v20 = vpack.c.bf16 %v757_v17, %v754_v16 }
 0x354   : > { %v819_v22 = vsel %vm546_vm3, %v814_v20, 0 }
 0x355   : > { %1931 = vmatpush3.bf16.xpose.msra.mxu1 %v819_v22  ;;  %v1790_v22 = vld [vmem:[%s2603_s6 + $0x20] sm:$0xff] }
 0x356   : > { %1942 = vmatprep.subr.bf16.mxu1 %v2151_v3 }
 0x35c   : > { %1933 = vmatmul.mubr.msk.bf16.vlgmr.msra.gmra.mrb[16].mxu1 %vm546_vm3, %v813_v23  ;;  %v1791_v23 = vld [vmem:[%s2603_s6 + $0x28] sm:$0xff] }
 0x35d   : > { %1944 = vmatprep.mubr.msk.bf16.mxu1 %vm2152_vm0, %v2151_v3  ;;  %1943 = vmatpush3.bf16.msra.mxu1 %v926_v55 }
 0x35e   : > { %1954 = vmatprep.subr.bf16.mxu1 %v2151_v3 }
 0x42f   : > { %v855_v24 = vpop.f32.mrb[16].mxu1 }
 0x430   : > { %v1934_v25 = vpop.f32.mrb[17].mxu1  ;;  %v861_v26 = vsel %vm448_vm1, %v855_v24, -inf }
 0x431   : > { %862 = vmax.xlane.f32.xlu0 %v861_v26  ;;  %v858_v27 = vpop.f32.mrb[18].mxu1 }
 0x432   : > { %v1935_v28 = vpop.f32.mrb[19].mxu1 }
 0x4be   : > { %v863_v37 = vpop.xlane.xlu0 %862 }
 0x4bf   : > { %v864_v38 = vsub.f32 %v855_v24, %v863_v37  ;;  %v1125_v24 = vpack.c.bf16 %v1791_v23, %v1790_v22 }
 0x4c1   : > { %v865_v39 = vmul.f32 1.442695, %v864_v38 }
 0x4c3   : > { %2073 = vpow2.f32 %v865_v39 }
 0x4c4   : > { %2075 = vrcp.f32 %v601_v40 }
 0x4cd   : > { %v2074_v43 = vpop.eup %2073 }
 0x4ce   : > { %v867_v44 = vsel %vm448_vm1, %v2074_v43, 0.0  ;;  %v870_v45 = vpack.c.bf16 %v2074_v43, %v2074_v43  ;;  %v2076_v47 = vpop.eup %2075 }
 0x4cf   : > { %868 = vadd.xlane.f32.xlu1 %v867_v44  ;;  %v648_v48 = vmul.f32 %v2076_v47, %v641_v6  ;;  %v1020_v6 = vpack.c.bf16 %v1781_v5, %v1780_v4  ;;  %v1807_v4 = vld [vmem:[%s2601_s4 + $0x38] sm:$0xff] }
 0x4d0   : > { %1939 = vmatmul.mubr.msk.bf16.vlgmr.msra.gmra.mrb[16].mxu0 %vm448_vm1, %v870_v45 }
 0x4d1   : > { %1949 = vmatpush3.bf16.msra.mxu0 %v972_v46  ;;  %1950 = vmatprep.mubr.msk.bf16.mxu0 %vm2152_vm0, %v2151_v3  ;;  %v649_v49 = vpack.c.bf16 %v648_v48, %v648_v48 }
 0x4d2   : > { %1962 = vmatprep.subr.bf16.mxu0 %v2151_v3 }
 0x4d8   : > { %1951 = vmatmul.mubr.msk.bf16.vlgmr.msra.gmra.mrb[20].mxu0 %vm546_vm3, %v649_v49 }
 0x4d9   : > { %1964 = vmatprep.mubr.msk.bf16.mxu0 %vm2152_vm0, %v2151_v3  ;;  %1963 = vmatpush3.bf16.msra.mxu0 %v1072_v53 }
 0x4da   : > { %1974 = vmatprep.subr.bf16.mxu0 %v2151_v3 }
 0x4e0   : > { %1965 = vmatmul.mubr.msk.bf16.vlgmr.msra.gmra.mrb[24].mxu0 %vm448_vm1, %v2291_v13 }
 0x4e1   : > { %1976 = vmatprep.mubr.msk.bf16.mxu0 %vm2152_vm0, %v2151_v3 }
 0x55c   : > { %v869_v56 = vpop.xlane.xlu1 %868 }
 0x55d   : > { %2077 = vrcp.f32 %v869_v56  ;;  %v1797_v56 = vld [vmem:[%s2605_s8 + $0x10] sm:$0xff] }
 0x55e   : > { %v1282_v57 = vpack.c.bf16 %v1797_v56, %v1797_v56 }
 0x560   : > { %v1287_v58 = vsel %vm924_vm4, %v1282_v57, 0 }
 0x567   : > { %v2078_v59 = vpop.eup %2077 }
 0x5a3   : > { %v909_v60 = vpop.f32.mrb[16].mxu0 }
 0x5a4   : > { %v916_v61 = vmul.f32 %v2078_v59, %v909_v60  ;;  %v1940_v62 = vpop.f32.mrb[17].mxu0  ;;  %v1799_v59 = vld [vmem:[%s2599_s2 + $0x60] sm:$0xff]  ;;  %v1800_v60 = vld [vmem:[%s2599_s2 + $0x68] sm:$0xff] }
 0x5a5   : > { %v912_v63 = vpop.f32.mrb[18].mxu0  ;;  %v1801_v62 = vld [vmem:[%s2599_s2 + $0x70] sm:$0xff] }
 0x5a6   : > { %v917_v1 = vpack.c.bf16 %v916_v61, %v916_v61  ;;  %v1941_v2 = vpop.f32.mrb[19].mxu0  ;;  %v1335_v61 = vpack.c.bf16 %v1800_v60, %v1799_v59  ;;  %v1802_v63 = vld [vmem:[%s2599_s2 + $0x78] sm:$0xff] }
 0x5a7   : > { %v1806_v2 = vld [vmem:[%s2601_s4 + $0x30] sm:$0xff] }
 0x5a8   : > { %1945 = vmatmul.mubr.msk.bf16.vlgmr.msra.gmra.mrb[20].mxu1 %vm546_vm3, %v917_v1 }
 0x5a9   : > { %1955 = vmatpush3.bf16.msra.mxu1 %v1019_v0  ;;  %1958 = vmatprep.mubr.msk.bf16.mxu1 %vm2152_vm0, %v2151_v3  ;;  %v1336_v0 = vpack.c.bf16 %v1802_v63, %v1801_v62 }
 0x5aa   : > { %1956 = vmatprep.subr.bf16.mxu1 %v2151_v3 }
 0x5ab   : > { %v1008_v7 = vpop.f32.mrb[20].mxu0 }
 0x5ac   : > { %v1952_v8 = vpop.f32.mrb[21].mxu0 }
 0x5ad   : > { %v1011_v9 = vpop.f32.mrb[22].mxu0  ;;  %1957 = vmatpush3.bf16.msra.mxu1 %v1020_v6 }
 0x5ae   : > { %v1953_v10 = vpop.f32.mrb[23].mxu0  ;;  %1968 = vmatprep.subr.bf16.mxu1 %v2151_v3 }
 0x5af   : > { %v1388_v10 = vpack.c.bf16 %v1807_v4, %v1806_v2  ;;  %v1820_v4 = vld [vmem:[%s2606_s9] ss:$0 sm:$0xff] }
 0x5b0   : > { %1959 = vmatmul.mubr.msk.bf16.vlgmr.msra.gmra.mrb[24].mxu1 %vm394_vm2, %v2293_v14 }
 0x5b1   : > { %1970 = vmatprep.mubr.msk.bf16.mxu1 %vm2152_vm0, %v2151_v3  ;;  %1969 = vmatpush3.bf16.msra.mxu1 %v1125_v24 }
 0x5b2   : > { %1980 = vmatprep.subr.bf16.mxu1 %v2151_v3 }
 0x5b3   : > { %v1115_v12 = vpop.f32.mrb[24].mxu0 }
 0x5b4   : > { %v1116_v15 = vadd.f32 %v1788_v11, %v1115_v12  ;;  %v1966_v16 = vpop.f32.mrb[25].mxu0 }
 0x5b5   : > { %v1118_v17 = vpop.f32.mrb[26].mxu0 }
 0x5b6   : > { %v1119_v18 = vadd.f32 %v1788_v11, %v1118_v17  ;;  %v1967_v19 = vpop.f32.mrb[27].mxu0 }
 0x5b7   : > { %v1812_v19 = vld [vmem:[%s2603_s6 + $0x38] sm:$0xff] }
 0x5b8   : > { %v1176_v20 = vpack.c.bf16 %v1119_v18, %v1116_v15  ;;  %1971 = vmatmul.mubr.msk.bf16.vlgmr.msra.gmra.mrb[28].mxu1 %vm448_vm1, %v2291_v13  ;;  %v1811_v18 = vld [vmem:[%s2603_s6 + $0x30] sm:$0xff] }
 0x5b9   : > { %1982 = vmatprep.mubr.msk.bf16.mxu1 %vm2152_vm0, %v2151_v3 }
 0x5ba   : > { %v1181_v21 = vsel %vm546_vm3, %v1176_v20, 0  ;;  %v1441_v20 = vpack.c.bf16 %v1812_v19, %v1811_v18 }
 0x5bb   : > { %1975 = vmatpush3.bf16.xpose.msra.mxu0 %v1181_v21 }
 0x5bc   : > { %1986 = vmatprep.subr.bf16.mxu0 %v2151_v3 }
 0x67b   : > { %v962_v25 = vpop.f32.mrb[20].mxu1 }
 0x67c   : > { %v2456_v26 = vadd.f32 %v1008_v7, %v962_v25  ;;  %v1946_v27 = vpop.f32.mrb[21].mxu1 }
 0x67d   : > { %v965_v28 = vpop.f32.mrb[22].mxu1  ;;  %v1809_v27 = vld [vmem:[%s2602_s5 + $0x3] ss:$0 sm:$0xff] }
 0x67e   : > { %v1947_v29 = vpop.f32.mrb[23].mxu1 }
 0x683   : > { %v1063_v31 = vpop.f32.mrb[24].mxu1 }
 0x684   : > { %v1064_v32 = vadd.f32 %v1783_v30, %v1063_v31  ;;  %v1960_v33 = vpop.f32.mrb[25].mxu1 }
 0x685   : > { %v1066_v34 = vpop.f32.mrb[26].mxu1  ;;  %v1804_v33 = vld [vmem:[%s2600_s3 + $0x3] ss:$0 sm:$0xff] }
 0x686   : > { %v1175_v35 = vpack.c.bf16 %v1064_v32, %v1064_v32  ;;  %v1961_v36 = vpop.f32.mrb[27].mxu1 }
 0x688   : > { %1977 = vmatmul.mubr.msk.bf16.vlgmr.msra.gmra.mrb[28].mxu0 %vm546_vm3, %v1175_v35 }
 0x689   : > { %1988 = vmatprep.mubr.msk.bf16.mxu0 %vm2152_vm0, %v2151_v3  ;;  %1987 = vmatpush3.bf16.msra.mxu0 %v1287_v58 }
 0x68a   : > { %2000 = vmatprep.subr.bf16.mxu0 %v2151_v3 }
 0x68b   : > { %v1168_v43 = vpop.f32.mrb[28].mxu1 }
 0x68c   : > { %v1169_v44 = vadd.f32 %v1793_v42, %v1168_v43  ;;  %v1972_v45 = vpop.f32.mrb[29].mxu1 }
 0x68d   : > { %v1171_v46 = vpop.f32.mrb[30].mxu1 }
 0x68e   : > { %v1172_v47 = vadd.f32 %v1793_v42, %v1171_v46  ;;  %v1973_v48 = vpop.f32.mrb[31].mxu1  ;;  %v1814_v42 = vld [vmem:[%s2604_s7 + $0x3] ss:$0 sm:$0xff] }
 0x690   : > { %v1233_v49 = vpack.c.bf16 %v1172_v47, %v1169_v44 }
 0x692   : > { %1981 = vmatpush3.bf16.msra.mxu1 %v1233_v49 }
 0x693   : > { %1992 = vmatprep.subr.bf16.mxu1 %v2151_v3 }
 0x75b   : > { %v1217_v37 = vpop.f32.mrb[28].mxu0 }
 0x75c   : > { %v1978_v38 = vpop.f32.mrb[29].mxu0  ;;  %v1223_v39 = vsel %vm448_vm1, %v1217_v37, -inf }
 0x75d   : > { %1224 = vmax.xlane.f32.xlu0 %v1223_v39  ;;  %v1220_v40 = vpop.f32.mrb[30].mxu0 }
 0x75e   : > { %v1979_v41 = vpop.f32.mrb[31].mxu0 }
 0x7ea   : > { %v1225_v50 = vpop.xlane.xlu0 %1224 }
 0x7eb   : > { %v1226_v51 = vsub.f32 %v1217_v37, %v1225_v50 }
 0x7ed   : > { %v1227_v52 = vmul.f32 1.442695, %v1226_v51 }
 0x7ef   : > { %2079 = vpow2.f32 %v1227_v52 }
 0x7f9   : > { %v2080_v53 = vpop.eup %2079 }
 0x7fa   : > { %v1229_v54 = vsel %vm448_vm1, %v2080_v53, 0.0  ;;  %v1232_v55 = vpack.c.bf16 %v2080_v53, %v2080_v53 }
 0x7fb   : > { %1230 = vadd.xlane.f32.xlu1 %v1229_v54 }
 0x7fc   : > { %1983 = vmatmul.mubr.msk.bf16.vlgmr.msra.gmra.mrb[32].mxu1 %vm448_vm1, %v1232_v55  ;;  %v1818_v55 = vld [vmem:[%s2605_s8 + $0x18] sm:$0xff] }
 0x7fd   : > { %1996 = vmatprep.mubr.msk.bf16.mxu1 %vm2152_vm0, %v2151_v3  ;;  %1993 = vmatpush3.bf16.msra.mxu1 %v1335_v61  ;;  %v1598_v56 = vpack.c.bf16 %v1818_v55, %v1818_v55 }
 0x7fe   : > { %1994 = vmatprep.subr.bf16.mxu1 %v2151_v3 }
 0x7ff   : > { %v1603_v57 = vsel %vm924_vm4, %v1598_v56, 0 }
 0x801   : > { %1995 = vmatpush3.bf16.msra.mxu1 %v1336_v0 }
 0x802   : > { %2006 = vmatprep.subr.bf16.mxu1 %v2151_v3 }
 0x804   : > { %1997 = vmatmul.mubr.msk.bf16.vlgmr.msra.gmra.mrb[36].mxu1 %vm394_vm2, %v2293_v14 }
 0x805   : > { %2008 = vmatprep.mubr.msk.bf16.mxu1 %vm2152_vm0, %v2151_v3  ;;  %2007 = vmatpush3.bf16.msra.mxu1 %v1441_v20 }
 0x806   : > { %2018 = vmatprep.subr.bf16.mxu1 %v2151_v3 }
 0x80c   : > { %2009 = vmatmul.mubr.msk.bf16.vlgmr.msra.gmra.mrb[40].mxu1 %vm448_vm1, %v2291_v13 }
 0x80d   : > { %2020 = vmatprep.mubr.msk.bf16.mxu1 %vm2152_vm0, %v2151_v3 }
 0x888   : > { %v1231_v1 = vpop.xlane.xlu1 %1230 }
 0x889   : > { %2081 = vrcp.f32 %v1231_v1 }
 0x893   : > { %v2082_v5 = vpop.eup %2081 }
 0x8cf   : > { %v1271_v6 = vpop.f32.mrb[32].mxu1 }
 0x8d0   : > { %v1278_v7 = vmul.f32 %v2082_v5, %v1271_v6  ;;  %v1984_v8 = vpop.f32.mrb[33].mxu1 }
 0x8d1   : > { %v1274_v9 = vpop.f32.mrb[34].mxu1 }
 0x8d2   : > { %v1279_v14 = vpack.c.bf16 %v1278_v7, %v1278_v7  ;;  %v1985_v11 = vpop.f32.mrb[35].mxu1 }
 0x8d4   : > { %1989 = vmatmul.mubr.msk.bf16.vlgmr.msra.gmra.mrb[32].mxu0 %vm546_vm3, %v1279_v14 }
 0x8d5   : > { %2001 = vmatpush3.bf16.msra.mxu0 %v1388_v10  ;;  %2002 = vmatprep.mubr.msk.bf16.mxu0 %vm2152_vm0, %v2151_v3 }
 0x8d6   : > { %2012 = vmatprep.subr.bf16.mxu0 %v2151_v3 }
 0x8d7   : > { %v1379_v12 = vpop.f32.mrb[36].mxu1 }
 0x8d8   : > { %v1998_v15 = vpop.f32.mrb[37].mxu1 }
 0x8d9   : > { %v1382_v16 = vpop.f32.mrb[38].mxu1 }
 0x8da   : > { %v1999_v17 = vpop.f32.mrb[39].mxu1 }
 0x8dc   : > { %2003 = vmatmul.mubr.msk.bf16.vlgmr.msra.gmra.mrb[36].mxu0 %vm448_vm1, %v2291_v13 }
 0x8dd   : > { %2014 = vmatprep.mubr.msk.bf16.mxu0 %vm2152_vm0, %v2151_v3 }
 0x8df   : > { %v1484_v43 = vpop.f32.mrb[40].mxu1 }
 0x8e0   : > { %v1485_v44 = vadd.f32 %v1814_v42, %v1484_v43  ;;  %v2010_v45 = vpop.f32.mrb[41].mxu1 }
 0x8e1   : > { %v1487_v46 = vpop.f32.mrb[42].mxu1 }
 0x8e2   : > { %v1488_v47 = vadd.f32 %v1814_v42, %v1487_v46  ;;  %v2011_v48 = vpop.f32.mrb[43].mxu1 }
 0x8e4   : > { %v1549_v49 = vpack.c.bf16 %v1488_v47, %v1485_v44 }
 0x8e6   : > { %2019 = vmatpush3.bf16.msra.mxu1 %v1549_v49 }
 0x9a7   : > { %v1323_v21 = vpop.f32.mrb[32].mxu0 }
 0x9a8   : > { %v2522_v22 = vadd.f32 %v1323_v21, %v2456_v26  ;;  %v1990_v23 = vpop.f32.mrb[33].mxu0  ;;  %v1380_v26 = vadd.f32 %v1804_v33, %v1379_v12 }
 0x9a9   : > { %v1326_v24 = vpop.f32.mrb[34].mxu0 }
 0x9aa   : > { %v1991_v25 = vpop.f32.mrb[35].mxu0  ;;  %v1491_v36 = vpack.c.bf16 %v1380_v26, %v1380_v26 }
 0x9af   : > { %v1431_v28 = vpop.f32.mrb[36].mxu0 }
 0x9b0   : > { %v2004_v29 = vpop.f32.mrb[37].mxu0  ;;  %v1432_v31 = vadd.f32 %v1809_v27, %v1431_v28 }
 0x9b1   : > { %v1434_v30 = vpop.f32.mrb[38].mxu0 }
 0x9b2   : > { %v1435_v32 = vadd.f32 %v1809_v27, %v1434_v30  ;;  %v2005_v13 = vpop.f32.mrb[39].mxu0 }
 0x9b4   : > { %v1492_v34 = vpack.c.bf16 %v1435_v32, %v1432_v31 }
 0x9b6   : > { %v1497_v35 = vsel %vm546_vm3, %v1492_v34, 0 }
 0x9b7   : > { %2013 = vmatpush3.bf16.xpose.msra.mxu0 %v1497_v35 }
 0x9b8   : > { %2024 = vmatprep.subr.bf16.mxu0 %v2151_v3 }
 0x9be   : > { %2015 = vmatmul.mubr.msk.bf16.vlgmr.msra.gmra.mrb[40].mxu0 %vm546_vm3, %v1491_v36 }
 0x9bf   : > { %2026 = vmatprep.mubr.msk.bf16.mxu0 %vm2152_vm0, %v2151_v3  ;;  %2025 = vmatpush3.bf16.msra.mxu0 %v1603_v57 }
 0xa91   : > { %v1533_v37 = vpop.f32.mrb[40].mxu0 }
 0xa92   : > { %v2016_v38 = vpop.f32.mrb[41].mxu0  ;;  %v1539_v39 = vsel %vm448_vm1, %v1533_v37, -inf }
 0xa93   : > { %1540 = vmax.xlane.f32.xlu0 %v1539_v39  ;;  %v1536_v40 = vpop.f32.mrb[42].mxu0 }
 0xa94   : > { %v2017_v41 = vpop.f32.mrb[43].mxu0 }
 0xb20   : > { %v1541_v3 = vpop.xlane.xlu0 %1540 }
 0xb21   : > { %v1542_v50 = vsub.f32 %v1533_v37, %v1541_v3 }
 0xb23   : > { %v1543_v51 = vmul.f32 1.442695, %v1542_v50 }
 0xb25   : > { %2083 = vpow2.f32 %v1543_v51 }
 0xb2f   : > { %v2084_v52 = vpop.eup %2083 }
 0xb30   : > { %v1545_v53 = vsel %vm448_vm1, %v2084_v52, 0.0  ;;  %v1548_v54 = vpack.c.bf16 %v2084_v52, %v2084_v52 }
 0xb31   : > { %1546 = vadd.xlane.f32.xlu1 %v1545_v53 }
 0xb32   : > { %2021 = vmatmul.mubr.msk.bf16.vlgmr.msra.gmra.mrb[44].mxu1 %vm448_vm1, %v1548_v54 }
 0xbbe   : > { %v1547_v58 = vpop.xlane.xlu1 %1546 }
 0xbbf   : > { %2085 = vrcp.f32 %v1547_v58 }
 0xbc9   : > { %v2086_v59 = vpop.eup %2085 }
 0xc05   : > { %v1587_v60 = vpop.f32.mrb[44].mxu1 }
 0xc06   : > { %v1594_v61 = vmul.f32 %v2086_v59, %v1587_v60  ;;  %v2022_v62 = vpop.f32.mrb[45].mxu1 }
 0xc07   : > { %v1590_v63 = vpop.f32.mrb[46].mxu1 }
 0xc08   : > { %v1595_v0 = vpack.c.bf16 %v1594_v61, %v1594_v61  ;;  %v2023_v1 = vpop.f32.mrb[47].mxu1 }
 0xc0a   : > { %2027 = vmatmul.mubr.msk.bf16.vlgmr.msra.gmra.mrb[44].mxu0 %vm546_vm3, %v1595_v0 }
 0xcdd   : > { %v1639_v2 = vpop.f32.mrb[44].mxu0 }
 0xcde   : > { %v1645_v5 = vadd.f32 %v1639_v2, %v2522_v22  ;;  %v2028_v6 = vpop.f32.mrb[45].mxu0 }
 0xcdf   : > { %v1642_v7 = vpop.f32.mrb[46].mxu0 }
 0xce0   : > { %v1653_v8 = vadd.f32 %v1820_v4, %v1645_v5  ;;  %v2029_v9 = vpop.f32.mrb[47].mxu0 }
 0xce2   : > { %1654 = vst [vmem:[%s365_s25] sm:$0xff] %v1653_v8 }
 0xce3   : > { %2100 = shalt.err (!%p2097_p3)
}
 0xce4   : > { %s2101_s11 = scalar_lea.hbm %s2555_s29, 128  ;;  %s2105_s27 = scalar_lea.hbm %s2607_s10, 256 }
 0xce5   : > { %p2102_p4 = scmp.ne.s32.totalorder %s2555_s29, %s2101_s11  ;;  %p2106_p9 = scmp.lt.u32.totalorder %s2555_s29, %s2607_s10 }
 0xce6   : > { %p2107_p10 = scmp.lt.u32.totalorder %s2105_s27, %s2101_s11  ;;  %p2109_p12 = scmp.lt.u32.totalorder %s2101_s11, %s2555_s29 }
 0xce7   : > { %p2103_p7 = pnand %p2102_p4, %p2247_p5 }
 0xce8   : > { %p2108_p11 = por %p2107_p10, %p2106_p9 }
 0xce9   : > { %p2104_p8 = pneg %p2103_p7 }
 0xcea   : > { %p2110_p13 = por %p2109_p12, %p2108_p11 }
 0xcec   : > { %p2111_p0 = pnand %p2110_p13, %p2104_p8 }
 0xcee   : > { %2114 = shalt.err (!%p2111_p0)
}
 0xcef   : > { %2030 = dma.vmem_to_hbm [thread:$0]  (%p2247_p5), %s2557_s26, 128, %s2555_s29, %s1656_s17  }
 0xcf0 PF: > { %p2036_p1 = scmp.ge.s32.totalorder %s2149_s16, 2  ;;  %s1681_s30 = sand.u32 1, %s2137_s13  }
 0xcf1   : > { %s1682_s18 = scalar_lea.sflag [#allocation3], %s1681_s30 }
 0xcf2   : > { %p2033_p2 = pnand %p2036_p1, %p2251_p6 }
 0xcf4   : > { %2132 = dma.done.wait (!%p2033_p2), %s1682_s18, 128  }
 0xcf5   : > { %2134 = vsyncadd (!%p2033_p2), %s1682_s18, 4294967168  ;;  %p20_p3 = scmp.ge.s32.totalorder %s2234_s19, 4   ;;  %s2610_s13 = smov %s2141_s14 }
 0xcf6   : > { %s2611_s14 = smov %s2145_s15  ;;  %s2612_s15 = smov %s2245_s22 }
 0xcf7   : > { %s2613_s16 = smov %s2234_s19  ;;  %22 = sbr.rel (!%p20_p3) target bundleno = 3 (0x3), region = 119 }
 0xcfe   :  { %1687 = vsyncpa [#allocation3], 1 }
 0xcff   :  { %1689 = vsyncpa [#allocation3 + $0x1], 1 }

</bundles_post_ra>
